<compile_context>
chip_gen: v5e
topology: v5e:2x2
jax: 0.10.0
libtpu: 0.0.40
codegen_flags: <defaults>
</compile_context>

<pallas_src>
import functools

import jax
import jax.numpy as jnp
from jax.experimental import pallas as pl
from jax.experimental.pallas import tpu as pltpu


def _round_up(x, m):
    return (x + m - 1) // m * m


def _one_conv_kernel(x_ref, w_ref, b_ref, o_ref, xpad_s, *, W, halo):
    # x_ref:  (NB, G0, HWp)       inputs: channels on sublanes, flat spatial on lanes
    # w_ref:  (9, G, G0)          conv weights, one (G, G0) matrix per 3x3 tap
    # b_ref:  (G, 1)              conv bias
    # o_ref:  (NB, G0+G, HWp)     concat([x, leaky_relu(conv(x))], channel axis)
    # xpad_s: (G0, HWp + 2*halo)  zero-halo scratch row (per image, reused)
    NB, G0, HWp = x_ref.shape
    G = w_ref.shape[1]

    # Zero only the halo lanes (the interior is rewritten for every image).
    # Done every grid step; cannot be guarded by program_id == 0 because with a
    # core-split "parallel" axis each TensorCore owns its own scratch and only
    # one core ever executes grid index 0.
    zeros_halo = jnp.zeros((G0, halo), xpad_s.dtype)
    xpad_s[:, 0:halo] = zeros_halo
    xpad_s[:, halo + HWp:halo + HWp + halo] = zeros_halo

    # Column-edge masks for the +/-1 column taps (row out-of-range taps read
    # zeros from the halo automatically).  '%' runs on a single lane row, then
    # a cheap sublane broadcast; hoisted out of the tap loop.
    col = jax.lax.broadcasted_iota(jnp.int32, (1, HWp), 1) % W
    col = jnp.broadcast_to(col, (G0, HWp))
    not_left = col > 0            # tap reads column w-1: invalid at w == 0
    not_right = col < (W - 1)     # tap reads column w+1: invalid at w == W-1

    bias = b_ref[...].astype(jnp.float32)            # (G, 1)
    w_taps = [w_ref[k] for k in range(9)]            # 9 x (G, G0), loaded once

    for b in range(NB):
        xb = x_ref[b]                                # (G0, HWp)
        # Store passthrough channels immediately (overlaps with MXU work and
        # keeps vreg live ranges short).  Note: if G0 % 8 != 0 this is a masked
        # partial-sublane store; pad channels in production if it matters.
        o_ref[b, 0:G0, :] = xb

        # Lane-aligned interior store into the zero-halo scratch row.
        xpad_s[:, halo:halo + HWp] = xb
        xpf = xpad_s[...]                            # (G0, HWp + 2*halo)

        # Accumulate the 9 tap matmuls directly -- no materialized im2col.
        acc = jnp.zeros((G, HWp), jnp.float32)
        for kh in range(3):
            for kw in range(3):
                dh, dw = kh - 1, kw - 1
                s = dh * W + dw                      # flattened shift of this tap
                t = xpf[:, halo + s:halo + s + HWp]  # (G0, HWp) shifted view
                if dw == -1:
                    t = jnp.where(not_left, t, 0.0)
                elif dw == 1:
                    t = jnp.where(not_right, t, 0.0)
                acc = acc + jnp.dot(w_taps[kh * 3 + kw], t,
                                    preferred_element_type=jnp.float32)

        acc = acc + bias                             # (G, HWp) + (G, 1)
        # LeakyReLU(0.1) on the f32 accumulator, then one lane-dense store.
        o_ref[b, G0:G0 + G, :] = jnp.where(acc > 0, acc, 0.1 * acc).astype(o_ref.dtype)


def _vmem_capacity_bytes():
    # Generation-aware physical VMEM (v5e/v6e: 128 MiB, v7x: 64 MiB per TC).
    try:
        cap = getattr(pltpu.get_tpu_info(), "vmem_capacity_bytes", None)
        if cap:
            return int(cap)
    except Exception:
        pass
    return 64 * 1024 * 1024  # conservative fallback (v7x per-TC size)


def _pick_batch_block(N, G0, G, HWp, halo, itemsize, budget):
    # Largest divisor of N whose per-step footprint (double-buffered in/out
    # blocks + the halo scratch row) fits the generation-aware budget, while
    # keeping the "parallel" grid at least 2 long (v7x has 2 TensorCores;
    # the extra ~0.35us grid step is harmless on single-TC v5e/v6e).
    per_img = 2 * (G0 + (G0 + G)) * HWp * itemsize
    fixed = G0 * (HWp + 2 * halo) * itemsize
    nb_cap = max(1, N // 2)
    nb = 1
    for cand in range(1, nb_cap + 1):
        if N % cand == 0 and fixed + cand * per_img <= budget:
            nb = cand
    return nb


def one_conv_forward(x_nchw, weight_oihw, bias):
    """x_nchw: (N, G0, H, W); weight_oihw: (G, G0, 3, 3) (PyTorch OIHW); bias: (G,).
    Returns (N, G0+G, H, W) == torch.cat((x, leaky_relu(conv(x), 0.1)), dim=1)."""
    N, G0, H, W = x_nchw.shape
    G = weight_oihw.shape[0]
    HW = H * W
    HWp = _round_up(HW, 128)          # keep the lane axis a multiple of 128
    halo = _round_up(W + 1, 128)      # >= max tap shift, lane-aligned interior

    # Free contiguous reshape NCHW -> (N, C, H*W); zero-pad the lane axis only
    # if H*W is not already a 128-multiple (no-op for the demo shape).
    x2 = x_nchw.reshape(N, G0, HW)
    if HWp != HW:
        x2 = jnp.pad(x2, ((0, 0), (0, 0), (0, HWp - HW)))

    # Tiny one-time repack: (G, G0, 3, 3) OIHW -> (9, G, G0), one matrix per tap.
    w2 = jnp.transpose(weight_oihw, (2, 3, 0, 1)).reshape(9, G, G0)
    b2 = bias.reshape(G, 1)

    cap = _vmem_capacity_bytes()
    budget = cap // 2                 # ~64 MiB on v5e/v6e, ~32 MiB on v7x
    vmem_limit = int(cap * 3 // 4)    # explicit scoped-VMEM limit with headroom

    NB = _pick_batch_block(N, G0, G, HWp, halo, x_nchw.dtype.itemsize, budget)
    grid = (N // NB,)

    kernel = functools.partial(_one_conv_kernel, W=W, halo=halo)
    out2 = pl.pallas_call(
        kernel,
        out_shape=jax.ShapeDtypeStruct((N, G0 + G, HWp), x_nchw.dtype),
        grid_spec=pltpu.PrefetchScalarGridSpec(
            num_scalar_prefetch=0,
            grid=grid,
            in_specs=[
                pl.BlockSpec((NB, G0, HWp), lambda n: (n, 0, 0)),
                pl.BlockSpec((9, G, G0), lambda n: (0, 0, 0)),
                pl.BlockSpec((G, 1), lambda n: (0, 0)),
            ],
            out_specs=pl.BlockSpec((NB, G0 + G, HWp), lambda n: (n, 0, 0)),
            scratch_shapes=[
                pltpu.VMEM((G0, HWp + 2 * halo), x_nchw.dtype),
            ],
        ),
        compiler_params=pltpu.CompilerParams(
            dimension_semantics=("parallel",),
            vmem_limit_bytes=vmem_limit),
    )(x2, w2, b2)

    if HWp != HW:
        out2 = out2[:, :, :HW]
    return out2.reshape(N, G0 + G, H, W)


def _reference(x_nchw, weight_oihw, bias):
    # Pure-JAX reference (lax conv) for a sanity check.
    y = jax.lax.conv_general_dilated(
        x_nchw, weight_oihw, window_strides=(1, 1), padding=((1, 1), (1, 1)),
        dimension_numbers=("NCHW", "OIHW", "NCHW"))
    y = y + bias.reshape(1, -1, 1, 1)
    y = jnp.where(y > 0, y, 0.1 * y)
    return jnp.concatenate([x_nchw, y], axis=1)


if __name__ == "__main__":
    key = jax.random.PRNGKey(0)
    k_x, k_w, k_b = jax.random.split(key, 3)

    N, G0, G, H, W = 2, 4, 4, 16, 16

    x = jax.random.normal(k_x, (N, G0, H, W), dtype=jnp.float32)
    # deterministic synthetic parameters (kaiming-uniform-ish scale, PyTorch OIHW)
    fan_in = G0 * 3 * 3
    bound = 1.0 / (fan_in ** 0.5)
    weight = jax.random.uniform(k_w, (G, G0, 3, 3), jnp.float32,
                                minval=-bound, maxval=bound)
    bias = jax.random.uniform(k_b, (G,), jnp.float32,
                              minval=-bound, maxval=bound)

    out = jax.block_until_ready(one_conv_forward(x, weight, bias))
    ref = jax.block_until_ready(_reference(x, weight, bias))

    assert out.shape == (N, G0 + G, H, W), out.shape
    assert jnp.allclose(out, ref, atol=1e-4, rtol=1e-4), \
        float(jnp.max(jnp.abs(out - ref)))

    print("KERNEL_OK")
</pallas_src>

<mosaic_0001>
module attributes {stable_mosaic.version = 11 : i64} {
  func.func @_one_conv_kernel(%arg0: i32, %arg1: memref<1x4x256xf32, #tpu.memory_space<vmem>>, %arg2: memref<9x4x4xf32, #tpu.memory_space<vmem>>, %arg3: memref<4x1xf32, #tpu.memory_space<vmem>>, %arg4: memref<1x8x256xf32, #tpu.memory_space<vmem>>, %arg5: memref<4x512xf32, #tpu.memory_space<vmem>>) attributes {dimension_semantics = [#tpu.dimension_semantics<parallel>], iteration_bounds = array<i64: 2>, scalar_prefetch = 0 : i64, scratch_operands = 1 : i64, tpu.core_type = #tpu.core_type<tc>, window_params = [{transform_indices = @transform_0, window_bounds = array<i64: 1, 4, 256>}, {pipeline_mode = #tpu.pipeline_mode<synchronous>, transform_indices = @transform_1, window_bounds = array<i64: 9, 4, 4>}, {pipeline_mode = #tpu.pipeline_mode<synchronous>, transform_indices = @transform_2, window_bounds = array<i64: 4, 1>}, {transform_indices = @transform_3, window_bounds = array<i64: 1, 8, 256>}]} {
    %cst = arith.constant 0.000000e+00 : f32
    %0 = vector.broadcast %cst : f32 to vector<4x128xf32>
    %c0 = arith.constant 0 : index
    %c0_0 = arith.constant 0 : index
    %1 = vector.load %arg5[%c0, %c0_0] : memref<4x512xf32, #tpu.memory_space<vmem>>, vector<4x128xf32>
    tpu.vector_store %arg5[%c0, %c0_0], %0 {strides = array<i32>} : memref<4x512xf32, #tpu.memory_space<vmem>>, vector<4x128xf32>,
    %c0_1 = arith.constant 0 : index
    %c384 = arith.constant 384 : index
    %2 = vector.load %arg5[%c0_1, %c384] : memref<4x512xf32, #tpu.memory_space<vmem>>, vector<4x128xf32>
    tpu.vector_store %arg5[%c0_1, %c384], %0 {strides = array<i32>} : memref<4x512xf32, #tpu.memory_space<vmem>>, vector<4x128xf32>,
    %3 = tpu.iota {dimensions = array<i32: 1>} : vector<1x256xi32>
    %c16_i32 = arith.constant 16 : i32
    %c0_i32 = arith.constant 0 : i32
    %4 = arith.cmpi eq, %c16_i32, %c0_i32 : i32
    %c1_i32 = arith.constant 1 : i32
    %5 = arith.select %4, %c1_i32, %c16_i32 : i32
    %6 = vector.broadcast %5 : i32 to vector<1x256xi32>
    %7 = arith.remsi %3, %6 : vector<1x256xi32>
    %c0_i32_2 = arith.constant 0 : i32
    %8 = vector.broadcast %c0_i32_2 : i32 to vector<1x256xi32>
    %9 = arith.cmpi ne, %7, %8 : vector<1x256xi32>
    %c0_i32_3 = arith.constant 0 : i32
    %10 = vector.broadcast %c0_i32_3 : i32 to vector<1x256xi32>
    %11 = arith.cmpi slt, %7, %10 : vector<1x256xi32>
    %c0_i32_4 = arith.constant 0 : i32
    %12 = arith.cmpi slt, %5, %c0_i32_4 : i32
    %13 = vector.broadcast %12 : i1 to vector<1x256xi1>
    %14 = vector.broadcast %13 : vector<1x256xi1> to vector<1x256xi1>
    %15 = arith.xori %11, %14 : vector<1x256xi1>
    %16 = arith.andi %15, %9 : vector<1x256xi1>
    %17 = vector.broadcast %5 : i32 to vector<1x256xi32>
    %18 = arith.addi %7, %17 : vector<1x256xi32>
    %19 = arith.select %16, %18, %7 : vector<1x256xi1>, vector<1x256xi32>
    %20 = vector.shape_cast %19 : vector<1x256xi32> to vector<1x256xi32>
    %21 = vector.broadcast %20 : vector<1x256xi32> to vector<4x256xi32>
    %c0_i32_5 = arith.constant 0 : i32
    %22 = vector.broadcast %c0_i32_5 : i32 to vector<4x256xi32>
    %23 = arith.cmpi sgt, %21, %22 : vector<4x256xi32>
    %c15_i32 = arith.constant 15 : i32
    %24 = vector.broadcast %c15_i32 : i32 to vector<4x256xi32>
    %25 = arith.cmpi slt, %21, %24 : vector<4x256xi32>
    %c0_6 = arith.constant 0 : index
    %c0_7 = arith.constant 0 : index
    %26 = vector.load %arg3[%c0_6, %c0_7] : memref<4x1xf32, #tpu.memory_space<vmem>>, vector<4x1xf32>
    %c0_8 = arith.constant 0 : index
    %c0_9 = arith.constant 0 : index
    %c0_10 = arith.constant 0 : index
    %27 = vector.load %arg2[%c0_8, %c0_9, %c0_10] : memref<9x4x4xf32, #tpu.memory_space<vmem>>, vector<1x4x4xf32>
    %28 = vector.shape_cast %27 : vector<1x4x4xf32> to vector<4x4xf32>
    %c1 = arith.constant 1 : index
    %c0_11 = arith.constant 0 : index
    %c0_12 = arith.constant 0 : index
    %29 = vector.load %arg2[%c1, %c0_11, %c0_12] : memref<9x4x4xf32, #tpu.memory_space<vmem>>, vector<1x4x4xf32>
    %30 = vector.shape_cast %29 : vector<1x4x4xf32> to vector<4x4xf32>
    %c2 = arith.constant 2 : index
    %c0_13 = arith.constant 0 : index
    %c0_14 = arith.constant 0 : index
    %31 = vector.load %arg2[%c2, %c0_13, %c0_14] : memref<9x4x4xf32, #tpu.memory_space<vmem>>, vector<1x4x4xf32>
    %32 = vector.shape_cast %31 : vector<1x4x4xf32> to vector<4x4xf32>
    %c3 = arith.constant 3 : index
    %c0_15 = arith.constant 0 : index
    %c0_16 = arith.constant 0 : index
    %33 = vector.load %arg2[%c3, %c0_15, %c0_16] : memref<9x4x4xf32, #tpu.memory_space<vmem>>, vector<1x4x4xf32>
    %34 = vector.shape_cast %33 : vector<1x4x4xf32> to vector<4x4xf32>
    %c4 = arith.constant 4 : index
    %c0_17 = arith.constant 0 : index
    %c0_18 = arith.constant 0 : index
    %35 = vector.load %arg2[%c4, %c0_17, %c0_18] : memref<9x4x4xf32, #tpu.memory_space<vmem>>, vector<1x4x4xf32>
    %36 = vector.shape_cast %35 : vector<1x4x4xf32> to vector<4x4xf32>
    %c5 = arith.constant 5 : index
    %c0_19 = arith.constant 0 : index
    %c0_20 = arith.constant 0 : index
    %37 = vector.load %arg2[%c5, %c0_19, %c0_20] : memref<9x4x4xf32, #tpu.memory_space<vmem>>, vector<1x4x4xf32>
    %38 = vector.shape_cast %37 : vector<1x4x4xf32> to vector<4x4xf32>
    %c6 = arith.constant 6 : index
    %c0_21 = arith.constant 0 : index
    %c0_22 = arith.constant 0 : index
    %39 = vector.load %arg2[%c6, %c0_21, %c0_22] : memref<9x4x4xf32, #tpu.memory_space<vmem>>, vector<1x4x4xf32>
    %40 = vector.shape_cast %39 : vector<1x4x4xf32> to vector<4x4xf32>
    %c7 = arith.constant 7 : index
    %c0_23 = arith.constant 0 : index
    %c0_24 = arith.constant 0 : index
    %41 = vector.load %arg2[%c7, %c0_23, %c0_24] : memref<9x4x4xf32, #tpu.memory_space<vmem>>, vector<1x4x4xf32>
    %42 = vector.shape_cast %41 : vector<1x4x4xf32> to vector<4x4xf32>
    %c8 = arith.constant 8 : index
    %c0_25 = arith.constant 0 : index
    %c0_26 = arith.constant 0 : index
    %43 = vector.load %arg2[%c8, %c0_25, %c0_26] : memref<9x4x4xf32, #tpu.memory_space<vmem>>, vector<1x4x4xf32>
    %44 = vector.shape_cast %43 : vector<1x4x4xf32> to vector<4x4xf32>
    %c0_27 = arith.constant 0 : index
    %c0_28 = arith.constant 0 : index
    %c0_29 = arith.constant 0 : index
    %45 = vector.load %arg1[%c0_27, %c0_28, %c0_29] : memref<1x4x256xf32, #tpu.memory_space<vmem>>, vector<1x4x256xf32>
    %46 = vector.shape_cast %45 : vector<1x4x256xf32> to vector<4x256xf32>
    %c0_30 = arith.constant 0 : index
    %c0_31 = arith.constant 0 : index
    %c0_32 = arith.constant 0 : index
    %47 = vector.load %arg4[%c0_30, %c0_31, %c0_32] : memref<1x8x256xf32, #tpu.memory_space<vmem>>, vector<1x4x256xf32>
    %48 = vector.shape_cast %47 : vector<1x4x256xf32> to vector<4x256xf32>
    %49 = vector.shape_cast %46 : vector<4x256xf32> to vector<1x4x256xf32>
    tpu.vector_store %arg4[%c0_30, %c0_31, %c0_32], %49 {strides = array<i32>} : memref<1x8x256xf32, #tpu.memory_space<vmem>>, vector<1x4x256xf32>,
    %c0_33 = arith.constant 0 : index
    %c128 = arith.constant 128 : index
    %50 = vector.load %arg5[%c0_33, %c128] : memref<4x512xf32, #tpu.memory_space<vmem>>, vector<4x256xf32>
    tpu.vector_store %arg5[%c0_33, %c128], %46 {strides = array<i32>} : memref<4x512xf32, #tpu.memory_space<vmem>>, vector<4x256xf32>,
    %c0_34 = arith.constant 0 : index
    %c0_35 = arith.constant 0 : index
    %51 = vector.load %arg5[%c0_34, %c0_35] : memref<4x512xf32, #tpu.memory_space<vmem>>, vector<4x512xf32>
    %cst_36 = arith.constant 0.000000e+00 : f32
    %52 = vector.broadcast %cst_36 : f32 to vector<4x256xf32>
    %53 = vector.extract_strided_slice %51 {offsets = [0, 111], sizes = [4, 256], strides = [1, 1]} : vector<4x512xf32> to vector<4x256xf32>
    %cst_37 = arith.constant 0.000000e+00 : f32
    %54 = vector.broadcast %cst_37 : f32 to vector<4x256xf32>
    %55 = arith.select %23, %53, %54 : vector<4x256xi1>, vector<4x256xf32>
    %cst_38 = arith.constant dense<0.000000e+00> : vector<4x256xf32>
    %56 = tpu.matmul %28, %55, %cst_38 {dimension_numbers = #tpu.dot_dimension_numbers<[1], [0], [0], [1], [0, 0, 1, 1], [], []>} : vector<4x4xf32>, vector<4x256xf32>, vector<4x256xf32> -> vector<4x256xf32>
    %57 = arith.addf %52, %56 : vector<4x256xf32>
    %58 = vector.extract_strided_slice %51 {offsets = [0, 112], sizes = [4, 256], strides = [1, 1]} : vector<4x512xf32> to vector<4x256xf32>
    %cst_39 = arith.constant dense<0.000000e+00> : vector<4x256xf32>
    %59 = tpu.matmul %30, %58, %cst_39 {dimension_numbers = #tpu.dot_dimension_numbers<[1], [0], [0], [1], [0, 0, 1, 1], [], []>} : vector<4x4xf32>, vector<4x256xf32>, vector<4x256xf32> -> vector<4x256xf32>
    %60 = arith.addf %57, %59 : vector<4x256xf32>
    %61 = vector.extract_strided_slice %51 {offsets = [0, 113], sizes = [4, 256], strides = [1, 1]} : vector<4x512xf32> to vector<4x256xf32>
    %cst_40 = arith.constant 0.000000e+00 : f32
    %62 = vector.broadcast %cst_40 : f32 to vector<4x256xf32>
    %63 = arith.select %25, %61, %62 : vector<4x256xi1>, vector<4x256xf32>
    %cst_41 = arith.constant dense<0.000000e+00> : vector<4x256xf32>
    %64 = tpu.matmul %32, %63, %cst_41 {dimension_numbers = #tpu.dot_dimension_numbers<[1], [0], [0], [1], [0, 0, 1, 1], [], []>} : vector<4x4xf32>, vector<4x256xf32>, vector<4x256xf32> -> vector<4x256xf32>
    %65 = arith.addf %60, %64 : vector<4x256xf32>
    %66 = vector.extract_strided_slice %51 {offsets = [0, 127], sizes = [4, 256], strides = [1, 1]} : vector<4x512xf32> to vector<4x256xf32>
    %cst_42 = arith.constant 0.000000e+00 : f32
    %67 = vector.broadcast %cst_42 : f32 to vector<4x256xf32>
    %68 = arith.select %23, %66, %67 : vector<4x256xi1>, vector<4x256xf32>
    %cst_43 = arith.constant dense<0.000000e+00> : vector<4x256xf32>
    %69 = tpu.matmul %34, %68, %cst_43 {dimension_numbers = #tpu.dot_dimension_numbers<[1], [0], [0], [1], [0, 0, 1, 1], [], []>} : vector<4x4xf32>, vector<4x256xf32>, vector<4x256xf32> -> vector<4x256xf32>
    %70 = arith.addf %65, %69 : vector<4x256xf32>
    %71 = vector.extract_strided_slice %51 {offsets = [0, 128], sizes = [4, 256], strides = [1, 1]} : vector<4x512xf32> to vector<4x256xf32>
    %cst_44 = arith.constant dense<0.000000e+00> : vector<4x256xf32>
    %72 = tpu.matmul %36, %71, %cst_44 {dimension_numbers = #tpu.dot_dimension_numbers<[1], [0], [0], [1], [0, 0, 1, 1], [], []>} : vector<4x4xf32>, vector<4x256xf32>, vector<4x256xf32> -> vector<4x256xf32>
    %73 = arith.addf %70, %72 : vector<4x256xf32>
    %74 = vector.extract_strided_slice %51 {offsets = [0, 129], sizes = [4, 256], strides = [1, 1]} : vector<4x512xf32> to vector<4x256xf32>
    %cst_45 = arith.constant 0.000000e+00 : f32
    %75 = vector.broadcast %cst_45 : f32 to vector<4x256xf32>
    %76 = arith.select %25, %74, %75 : vector<4x256xi1>, vector<4x256xf32>
    %cst_46 = arith.constant dense<0.000000e+00> : vector<4x256xf32>
    %77 = tpu.matmul %38, %76, %cst_46 {dimension_numbers = #tpu.dot_dimension_numbers<[1], [0], [0], [1], [0, 0, 1, 1], [], []>} : vector<4x4xf32>, vector<4x256xf32>, vector<4x256xf32> -> vector<4x256xf32>
    %78 = arith.addf %73, %77 : vector<4x256xf32>
    %79 = vector.extract_strided_slice %51 {offsets = [0, 143], sizes = [4, 256], strides = [1, 1]} : vector<4x512xf32> to vector<4x256xf32>
    %cst_47 = arith.constant 0.000000e+00 : f32
    %80 = vector.broadcast %cst_47 : f32 to vector<4x256xf32>
    %81 = arith.select %23, %79, %80 : vector<4x256xi1>, vector<4x256xf32>
    %cst_48 = arith.constant dense<0.000000e+00> : vector<4x256xf32>
    %82 = tpu.matmul %40, %81, %cst_48 {dimension_numbers = #tpu.dot_dimension_numbers<[1], [0], [0], [1], [0, 0, 1, 1], [], []>} : vector<4x4xf32>, vector<4x256xf32>, vector<4x256xf32> -> vector<4x256xf32>
    %83 = arith.addf %78, %82 : vector<4x256xf32>
    %84 = vector.extract_strided_slice %51 {offsets = [0, 144], sizes = [4, 256], strides = [1, 1]} : vector<4x512xf32> to vector<4x256xf32>
    %cst_49 = arith.constant dense<0.000000e+00> : vector<4x256xf32>
    %85 = tpu.matmul %42, %84, %cst_49 {dimension_numbers = #tpu.dot_dimension_numbers<[1], [0], [0], [1], [0, 0, 1, 1], [], []>} : vector<4x4xf32>, vector<4x256xf32>, vector<4x256xf32> -> vector<4x256xf32>
    %86 = arith.addf %83, %85 : vector<4x256xf32>
    %87 = vector.extract_strided_slice %51 {offsets = [0, 145], sizes = [4, 256], strides = [1, 1]} : vector<4x512xf32> to vector<4x256xf32>
    %cst_50 = arith.constant 0.000000e+00 : f32
    %88 = vector.broadcast %cst_50 : f32 to vector<4x256xf32>
    %89 = arith.select %25, %87, %88 : vector<4x256xi1>, vector<4x256xf32>
    %cst_51 = arith.constant dense<0.000000e+00> : vector<4x256xf32>
    %90 = tpu.matmul %44, %89, %cst_51 {dimension_numbers = #tpu.dot_dimension_numbers<[1], [0], [0], [1], [0, 0, 1, 1], [], []>} : vector<4x4xf32>, vector<4x256xf32>, vector<4x256xf32> -> vector<4x256xf32>
    %91 = arith.addf %86, %90 : vector<4x256xf32>
    %92 = vector.broadcast %26 : vector<4x1xf32> to vector<4x256xf32>
    %93 = arith.addf %91, %92 : vector<4x256xf32>
    %cst_52 = arith.constant 0.000000e+00 : f32
    %94 = vector.broadcast %cst_52 : f32 to vector<4x256xf32>
    %95 = arith.cmpf ogt, %93, %94 : vector<4x256xf32>
    %cst_53 = arith.constant 1.000000e-01 : f32
    %96 = vector.broadcast %cst_53 : f32 to vector<4x256xf32>
    %97 = arith.mulf %96, %93 : vector<4x256xf32>
    %98 = arith.select %95, %93, %97 : vector<4x256xi1>, vector<4x256xf32>
    %c0_54 = arith.constant 0 : index
    %c4_55 = arith.constant 4 : index
    %c0_56 = arith.constant 0 : index
    %99 = vector.load %arg4[%c0_54, %c4_55, %c0_56] : memref<1x8x256xf32, #tpu.memory_space<vmem>>, vector<1x4x256xf32>
    %100 = vector.shape_cast %99 : vector<1x4x256xf32> to vector<4x256xf32>
    %101 = vector.shape_cast %98 : vector<4x256xf32> to vector<1x4x256xf32>
    tpu.vector_store %arg4[%c0_54, %c4_55, %c0_56], %101 {strides = array<i32>} : memref<1x8x256xf32, #tpu.memory_space<vmem>>, vector<1x4x256xf32>,
    return
  }
  func.func @transform_0(%arg0: i32) -> (i32, i32, i32) {
    %c0_i32 = arith.constant 0 : i32
    %c0_i32_0 = arith.constant 0 : i32
    %c0_i32_1 = arith.constant 0 : i32
    return %arg0, %c0_i32, %c0_i32_0 : i32, i32, i32
  }
  func.func @transform_1(%arg0: i32) -> (i32, i32, i32) {
    %c0_i32 = arith.constant 0 : i32
    %c0_i32_0 = arith.constant 0 : i32
    %c0_i32_1 = arith.constant 0 : i32
    %c0_i32_2 = arith.constant 0 : i32
    return %c0_i32, %c0_i32_0, %c0_i32_1 : i32, i32, i32
  }
  func.func @transform_2(%arg0: i32) -> (i32, i32) {
    %c0_i32 = arith.constant 0 : i32
    %c0_i32_0 = arith.constant 0 : i32
    %c0_i32_1 = arith.constant 0 : i32
    return %c0_i32, %c0_i32_0 : i32, i32
  }
  func.func @transform_3(%arg0: i32) -> (i32, i32, i32) {
    %c0_i32 = arith.constant 0 : i32
    %c0_i32_0 = arith.constant 0 : i32
    %c0_i32_1 = arith.constant 0 : i32
    return %arg0, %c0_i32, %c0_i32_0 : i32, i32, i32
  }
}

</mosaic_0001>

<bundles_post_ra>
// kernel: tpu_custom_call.1
= control target key start
LH: loop header
LB: loop body
LE: loop exit
PB: predicated region body
PF: predicated region fallthrough
CT: control target
= control target key end

     0   :  { %8 = vsyncpa [#allocation4], 0  ;;  %s1371_s0 = inlined_call_operand.vmem [shape: f32[2,4,256], index: 0, kind: input, shape index: {}]   ;;  %s1372_s1 = inlined_call_operand.vmem [shape: f32[9,4,4], index: 1, kind: input, shape index: {}]   ;;  %s1373_s2 = inlined_call_operand.vmem [shape: f32[4,1], index: 2, kind: input, shape index: {}]   ;;  %s1374_s3 = inlined_call_operand.hbm [shape: f32[2,8,256], index: 3, kind: output, shape index: {}]  }
   0x1   :  { %10 = vsyncpa [#allocation4 + $0x1], 0  ;;  %s1133_s12 = smov 0   ;;  %s1135_s13 = smov 0  }
   0x2   :  { %s1137_s14 = smov 0   ;;  %s1139_s15 = smov 0  }
   0x3 LB: > { %s1154_s16 = sadd.s32 4294967295, %s1101_s15   ;;  %s931_s17 = sadd.s32 4294967294, %s1101_s15   ;;  %s1101_s15 = sphi %s1139_s15, %s1388_s15   ;;  %s1097_s14 = sphi %s1137_s14, %s1387_s14   ;;  %s1093_s13 = sphi %s1135_s13, %s1386_s13   ;;  %s1089_s12 = sphi %s1133_s12, %s1385_s12  }
   0x4   : > { %s1158_s18 = sadd.s32 1, %s1101_s15   ;;  %s91_s19 = sadd.s32 1, %s1097_s14 }
   0x5   : > { %s88_s20 = ssub.s32 %s1101_s15, %s1158_s18  ;;  %p101_p0 = scmp.ne.s32.totalorder %s1097_s14, %s1093_s13 }
   0x6   : > { %p89_p1 = scmp.eq.s32.totalorder %s88_s20, 0  ;;  %p102_p2 = scmp.eq.s32.totalorder %s1154_s16, 1 }
   0x7   : > { %p107_p3 = scmp.ne.s32.totalorder %s1093_s13, %s1089_s12  ;;  %p108_p4 = scmp.eq.s32.totalorder %s931_s17, 1 }
   0x8   : > { %s1169_s21 = scalar_select %p89_p1, %s1097_s14, %s91_s19  }
   0x9   : > { %p1171_p5 = por %p102_p2, %p101_p0  ;;  %p1175_p6 = por %p108_p4, %p107_p3 }
   0xa   : > { %p934_p7 = scmp.ge.s32.totalorder %s1101_s15, 1  ;;  %p140_p8 = scmp.lt.s32.totalorder %s1101_s15, 3 }
   0xc   : > { %p141_p9 = pnand %p934_p7, %p140_p8 }
   0xd   : > { %p164_p10 = scmp.lt.s32.totalorder (!%p141_p9), %s1154_s16, 1  ;;  %s1104_s29 = smov (!%p141_p9), 17  }
   0xe   : > { %144 = sbr.rel (%p141_p9) target bundleno = 362 (0x16a), region = 32  ;;  %s1105_s30 = smov (!%p141_p9), 16  }
   0xf   : > { %s1106_s4 = smov (!%p141_p9), 15   ;;  %s1107_s5 = smov (!%p141_p9), 1  }
  0x10   : > { %s1108_s6 = smov (!%p141_p9), 127   ;;  %s1109_s7 = smov (!%p141_p9), 113  }
  0x11   : > { %s1110_s8 = smov (!%p141_p9), 112   ;;  %s1111_s9 = smov (!%p141_p9), 111  }
  0x12   : > { %s161_s17 = sand.u32 (!%p141_p9), 1, %s1093_s13  }
  0x13   : > { %v1103_v0 = vmov 0.0   ;;  %s165_s24 = scalar_select %p164_p10, %s1154_s16, 1  ;;  %vm265_vm0 = vcmask 130048   ;;  %v171_v33 = vlaneseq  ;;  %vm272_vm1 = vcmask 1043456   ;;  %v938_v35 = vld [vmem:[%s1372_s1 + $0x4] sm:$0xf] }
  0x14   : > { %170 = vst [vmem:[#allocation2 + $0xc] sm:$0xf] %v1103_v0  ;;  %vm268_vm2 = vcmask 31744   ;;  %vm246_vm3 = vcmask 138240   ;;  %v203_v50 = vld [vmem:[%s1372_s1] sm:$0xf] }
  0x15   : > { %169 = vst [vmem:[#allocation2] sm:$0xf] %v1103_v0  ;;  %s987_s25 = sshll.u32 %s165_s24, 3  ;;  %v172_v37 = vand.u32 127, %v171_v33  ;;  %vm378_vm6 = vcmask 121856   ;;  %vm448_vm9 = vcmask 7168  }
  0x16   : > { %s168_s28 = scalar_lea.vmem %s1371_s0, %s987_s25  ;;  %v939_v60 = vld [vmem:[%s1372_s1 + $0x8] sm:$0xf]  ;;  %vm572_vm10 = vcmask 1039360   ;;  %vm642_vm11 = vcmask 924672   ;;  %vm712_vm12 = vcmask 916480   ;;  %vm776_vm13 = vcmask 908288  }
  0x17   : > { %v220_v1 = vld [vmem:[%s168_s28] sm:$0xff]  ;;  %v173_v39 = vadd.s32 128, %v172_v37  ;;  %v178_v41 = vand.u32 15, %v172_v37  ;;  %s935_s19 = sshll.u32 %s161_s17, 4  ;;  %s988_s24 = sshll.u32 %s1154_s16, 4 }
  0x18   : > { %229 = vst [vmem:[#allocation2 + $0x4] sm:$0xff] %v220_v1  ;;  %v945_v37 = vld [vmem:[%s1372_s1 + $0x20] sm:$0xf]  ;;  %s1329_s20 = scalar_lea.vmem [#allocation3], %s935_s19  ;;  %s867_s27 = scalar_lea.hbm %s1374_s3, %s988_s24 }
  0x19   : > { %222 = vst [vmem:[#allocation1] ss:$2 sm:$0xff] %v220_v1  ;;  %v185_v42 = vand.u32 15, %v173_v39  ;;  %vm1222_vm4 = vcmp.gt.s32.totalorder %v178_v41, 0  ;;  %vm1244_vm7 = vcmp.lt.s32.totalorder %v178_v41, 15  ;;  %s869_s28 = sshll.u32 %s1329_s20, 4  ;;  %s870_s28 = int_to_ptr.vmem [resolvable:$true] %s869_s28 }
  0x1a   : > { %s856_s16 = scalar_lea.sflag [#allocation4], %s161_s17 }
  0x1b   : > { %vm1226_vm5 = vcmp.gt.s32.totalorder %v185_v42, 0  ;;  %vm1248_vm8 = vcmp.lt.s32.totalorder %v185_v42, 15 }
  0x1f   : > { %v1186_v2 = vld [vmem:[#allocation2 + $0x8] sm:$0xff]  ;;  %v1188_v3 = vld [vmem:[#allocation2] sm:$0xff] }
  0x20   : > { %236 = vst [vmem:[#allocation1 + $0x10] ss:$2 sm:$0xff] %v1186_v2  ;;  %v1191_v4 = vld.sshfl [vmem:[#allocation1] sm:$0xff pattern:$0x75316420] }
  0x21   : > { %v1193_v5 = vld.sshfl [vmem:[#allocation1 + $0x8] sm:$0xff pattern:$0x75316420]  ;;  %227 = vst [vmem:[%s1329_s20] sm:$0xf] %v1191_v4 }
  0x22   : > { %234 = vst [vmem:[#allocation1] ss:$2 sm:$0xff] %v1188_v3 }
  0x23   : > { %228 = vst [vmem:[%s1329_s20 + $0x8] sm:$0xf] %v1193_v5 }
  0x27   : > { %v239_v6 = vld.sshfl [vmem:[#allocation1 + $0x10] sm:$0xff pattern:$0x75316420] }
  0x28   : > { %244 = vrot.lane.b32.xlu1 %v239_v6, %s1104_s29  ;;  %255 = vst [vmem:[#allocation1 + $0x10] ss:$2 sm:$0xff] %v1186_v2  ;;  %v940_v6 = vld [vmem:[%s1372_s1 + $0xc] sm:$0xf] }
  0x29   : > { %v237_v7 = vld.sshfl [vmem:[#allocation1] sm:$0xff pattern:$0x75316420]  ;;  %v238_v8 = vld.sshfl [vmem:[#allocation1 + $0x8] sm:$0xff pattern:$0x75316420] }
  0x2a   : > { %240 = vrot.lane.b32.xlu0 %v237_v7, %s1104_s29  ;;  %253 = vst [vmem:[#allocation1] ss:$2 sm:$0xff] %v1188_v3 }
  0x2f   : > { %v258_v9 = vld.sshfl [vmem:[#allocation1 + $0x10] sm:$0xff pattern:$0x75316420] }
  0x30   : > { %368 = vst [vmem:[#allocation1 + $0x10] ss:$2 sm:$0xff] %v1186_v2 }
  0x31   : > { %v256_v10 = vld.sshfl [vmem:[#allocation1] sm:$0xff pattern:$0x75316420]  ;;  %v257_v11 = vld.sshfl [vmem:[#allocation1 + $0x8] sm:$0xff pattern:$0x75316420] }
  0x32   : > { %242 = vrot.lane.b32.xlu0 %v238_v8, %s1104_s29  ;;  %259 = vrot.lane.b32.xlu1 %v256_v10, %s1105_s30  ;;  %366 = vst [vmem:[#allocation1] ss:$2 sm:$0xff] %v1188_v3  ;;  %s871_s29 = sshll.u32 %s867_s27, 4  ;;  %s872_s29 = int_to_ptr.hbm [resolvable:$true] %s871_s29 }
  0x33   : > { %261 = vrot.lane.b32.xlu2 %v257_v11, %s1105_s30  ;;  %v202_v11 = vld [vmem:[%s1373_s2] sm:$0xf] }
  0x37   : > { %v371_v12 = vld.sshfl [vmem:[#allocation1 + $0x10] sm:$0xff pattern:$0x75316420] }
  0x38   : > { %438 = vst [vmem:[#allocation1 + $0x10] ss:$2 sm:$0xff] %v1186_v2 }
  0x39   : > { %v370_v13 = vld.sshfl [vmem:[#allocation1 + $0x8] sm:$0xff pattern:$0x75316420]  ;;  %v369_v14 = vld.sshfl [vmem:[#allocation1] sm:$0xff pattern:$0x75316420] }
  0x3a   : > { %374 = vrot.lane.b32.xlu1 %v370_v13, %s1106_s4  ;;  %372 = vrot.lane.b32.xlu0 %v369_v14, %s1106_s4  ;;  %436 = vst [vmem:[#allocation1] ss:$2 sm:$0xff] %v1188_v3 }
  0x3b   : > { %263 = vrot.lane.b32.xlu2 %v258_v9, %s1105_s30  ;;  %v941_v9 = vld [vmem:[%s1372_s1 + $0x10] sm:$0xf]  ;;  %s1053_s30 = sshra.s32 %s872_s29, 4  ;;  %s1054_s30 = int_to_ptr.hbm [resolvable:$true] %s1053_s30 }
  0x3c   : > { %p1060_p0 = scmp.lt.s32.totalorder %s1054_s30, %s1374_s3 }
  0x3f   : > { %v441_v15 = vld.sshfl [vmem:[#allocation1 + $0x10] sm:$0xff pattern:$0x75316420] }
  0x40   : > { %508 = vst [vmem:[#allocation1 + $0x10] ss:$2 sm:$0xff] %v1186_v2 }
  0x41   : > { %v440_v16 = vld.sshfl [vmem:[#allocation1 + $0x8] sm:$0xff pattern:$0x75316420]  ;;  %v439_v17 = vld.sshfl [vmem:[#allocation1] sm:$0xff pattern:$0x75316420] }
  0x42   : > { %444 = vrot.lane.b32.xlu1 %v440_v16, %s1107_s5  ;;  %442 = vrot.lane.b32.xlu0 %v439_v17, %s1107_s5  ;;  %506 = vst [vmem:[#allocation1] ss:$2 sm:$0xff] %v1188_v3 }
  0x43   : > { %376 = vrot.lane.b32.xlu2 %v371_v12, %s1106_s4  ;;  %v1112_v12 = vmov 0   ;;  %s1055_s4 = scalar_lea.hbm %s1054_s30, 16 }
  0x44   : > { %1038 = vset.pattern.permute.xlu0 %v1112_v12  ;;  %p1056_p11 = scmp.ne.s32.totalorder %s1054_s30, %s1055_s4 }
  0x46   : > { %p1057_p12 = pnand %p1056_p11, %p1171_p5 }
  0x47   : > { %v1204_v18 = vld.sshfl [vmem:[#allocation1 + $0x10] sm:$0xff pattern:$0x75316420] }
  0x48   : > { %562 = vst [vmem:[#allocation1 + $0x10] ss:$2 sm:$0xff] %v1186_v2  ;;  %p1058_p13 = pneg %p1057_p12 }
  0x49   : > { %v1207_v19 = vld.sshfl [vmem:[#allocation1 + $0x8] sm:$0xff pattern:$0x75316420] }
  0x4a   : > { %560 = vst [vmem:[#allocation1] ss:$2 sm:$0xff] %v1188_v3 }
  0x4b   : > { %446 = vrot.lane.b32.xlu2 %v441_v15, %s1107_s5  ;;  %v942_v15 = vld [vmem:[%s1372_s1 + $0x14] sm:$0xf] }
  0x4f   : > { %v564_v20 = vld.sshfl [vmem:[#allocation1 + $0x10] sm:$0xff pattern:$0x75316420]  ;;  %v565_v21 = vld.sshfl [vmem:[#allocation1 + $0x18] sm:$0xff pattern:$0x75316420] }
  0x50   : > { %632 = vst [vmem:[#allocation1 + $0x10] ss:$2 sm:$0xff] %v1186_v2  ;;  %568 = vrot.lane.b32.xlu1 %v564_v20, %s1108_s6 }
  0x51   : > { %v563_v22 = vld.sshfl [vmem:[#allocation1 + $0x8] sm:$0xff pattern:$0x75316420] }
  0x52   : > { %566 = vrot.lane.b32.xlu0 %v563_v22, %s1108_s6  ;;  %630 = vst [vmem:[#allocation1] ss:$2 sm:$0xff] %v1188_v3 }
  0x53   : > { %570 = vrot.lane.b32.xlu2 %v565_v21, %s1108_s6 }
  0x57   : > { %v635_v23 = vld.sshfl [vmem:[#allocation1 + $0x18] sm:$0xff pattern:$0x75316420]  ;;  %v634_v24 = vld.sshfl [vmem:[#allocation1 + $0x10] sm:$0xff pattern:$0x75316420] }
  0x58   : > { %702 = vst [vmem:[#allocation1 + $0x10] ss:$2 sm:$0xff] %v1186_v2  ;;  %638 = vrot.lane.b32.xlu1 %v634_v24, %s1109_s7 }
  0x59   : > { %v633_v25 = vld.sshfl [vmem:[#allocation1 + $0x8] sm:$0xff pattern:$0x75316420] }
  0x5a   : > { %636 = vrot.lane.b32.xlu0 %v633_v25, %s1109_s7  ;;  %700 = vst [vmem:[#allocation1] ss:$2 sm:$0xff] %v1188_v3 }
  0x5b   : > { %640 = vrot.lane.b32.xlu2 %v635_v23, %s1109_s7  ;;  %v943_v23 = vld [vmem:[%s1372_s1 + $0x18] sm:$0xf]  ;;  %s1059_s7 = scalar_lea.hbm %s1374_s3, 32 }
  0x5c   : > { %p1061_p1 = scmp.lt.s32.totalorder %s1059_s7, %s1055_s4 }
  0x5e   : > { %p1062_p2 = por %p1061_p1, %p1060_p0 }
  0x5f   : > { %v705_v26 = vld.sshfl [vmem:[#allocation1 + $0x18] sm:$0xff pattern:$0x75316420]  ;;  %v704_v27 = vld.sshfl [vmem:[#allocation1 + $0x10] sm:$0xff pattern:$0x75316420] }
  0x60   : > { %708 = vrot.lane.b32.xlu1 %v704_v27, %s1110_s8  ;;  %766 = vst [vmem:[#allocation1 + $0x10] ss:$2 sm:$0xff] %v1186_v2  ;;  %p1063_p3 = pnand %p1062_p2, %p1058_p13 }
  0x61   : > { %v703_v28 = vld.sshfl [vmem:[#allocation1 + $0x8] sm:$0xff pattern:$0x75316420] }
  0x62   : > { %706 = vrot.lane.b32.xlu0 %v703_v28, %s1110_s8  ;;  %764 = vst [vmem:[#allocation1] ss:$2 sm:$0xff] %v1188_v3 }
  0x63   : > { %710 = vrot.lane.b32.xlu2 %v705_v26, %s1110_s8 }
  0x67   : > { %v768_v29 = vld.sshfl [vmem:[#allocation1 + $0x10] sm:$0xff pattern:$0x75316420]  ;;  %v769_v30 = vld.sshfl [vmem:[#allocation1 + $0x18] sm:$0xff pattern:$0x75316420] }
  0x68   : > { %772 = vrot.lane.b32.xlu1 %v768_v29, %s1111_s9 }
  0x69   : > { %v767_v31 = vld.sshfl [vmem:[#allocation1 + $0x8] sm:$0xff pattern:$0x75316420] }
  0x6a   : > { %770 = vrot.lane.b32.xlu0 %v767_v31, %s1111_s9 }
  0x6b   : > { %774 = vrot.lane.b32.xlu2 %v769_v30, %s1111_s9  ;;  %v944_v30 = vld [vmem:[%s1372_s1 + $0x1c] sm:$0xf] }
  0x72   : > { %836 = vperm.xlu0 %1038, %v202_v11  }
  0x8d   : > { %v262_v32 = vpop.permute.xlu2 %261 }
  0x95   : > { %v264_v34 = vpop.permute.xlu2 %263 }
  0x96   : > { %v267_v36 = vsel %vm265_vm0, %v262_v32, %v264_v34 }
  0x97   : > { %948 = vmatpush.msk.msra.mxu1 %vm272_vm1, %v267_v36 }
  0x98   : > { %949 = vmatmul.msk.f32.vlgmr.msra.gmra.mxu1 %vm268_vm2, %v938_v35 }
  0x9a   : > { %v245_v38 = vpop.permute.xlu1 %244 }
  0x9c   : > { %v241_v40 = vpop.permute.xlu0 %240 }
  0x9d   : > { %v377_v53 = vpop.permute.xlu2 %376 }
  0xa4   : > { %v243_v45 = vpop.permute.xlu0 %242  ;;  %v260_v46 = vpop.permute.xlu1 %259 }
  0xa5   : > { %v266_v47 = vsel %vm265_vm0, %v260_v46, %v262_v32  ;;  %v247_v48 = vsel %vm246_vm3, %v241_v40, %v243_v45  ;;  %v248_v49 = vsel %vm246_vm3, %v243_v45, %v245_v38  ;;  %v447_v63 = vpop.permute.xlu2 %446 }
  0xa6   : > { %946 = vmatpush.msk.msra.mxu0 %vm272_vm1, %v266_v47  ;;  %v251_v51 = vsel %vm1222_vm4, %v247_v48, 0.0  ;;  %v252_v52 = vsel %vm1226_vm5, %v248_v49, 0.0 }
  0xa7   : > { %950 = vmatpush.msk.msra.mxu2 %vm272_vm1, %v251_v51  ;;  %952 = vmatpush.msk.msra.mxu3 %vm272_vm1, %v252_v52 }
  0xa8   : > { %947 = vmatmul.msk.f32.vlgmr.msra.gmra.mxu0 %vm268_vm2, %v938_v35  ;;  %951 = vmatmul.msk.f32.vlgmr.msra.gmra.mxu2 %vm268_vm2, %v203_v50 }
  0xa9   : > { %953 = vmatmul.msk.f32.vlgmr.msra.gmra.mxu3 %vm268_vm2, %v203_v50 }
  0xac   : > { %v375_v56 = vpop.permute.xlu1 %374  ;;  %v373_v57 = vpop.permute.xlu0 %372 }
  0xad   : > { %v380_v58 = vsel %vm378_vm6, %v375_v56, %v377_v53  ;;  %v379_v59 = vsel %vm378_vm6, %v373_v57, %v375_v56  ;;  %v571_v10 = vpop.permute.xlu2 %570 }
  0xae   : > { %v383_v61 = vsel %vm1244_vm7, %v379_v59, 0.0  ;;  %v384_v62 = vsel %vm1248_vm8, %v380_v58, 0.0 }
  0xaf   : > { %954 = vmatpush.msk.msrb.mxu0 %vm272_vm1, %v383_v61  ;;  %956 = vmatpush.msk.msrb.mxu1 %vm272_vm1, %v384_v62 }
  0xb0   : > { %955 = vmatmul.msk.f32.vlgmr.msrb.gmra.mxu0 %vm268_vm2, %v939_v60  ;;  %957 = vmatmul.msk.f32.vlgmr.msrb.gmra.mxu1 %vm268_vm2, %v939_v60 }
  0xb1   : > { %962 = vmatpush.msk.msra.mxu0 %vm272_vm1, %v1207_v19  ;;  %964 = vmatpush.msk.msra.mxu1 %vm272_vm1, %v1204_v18 }
  0xb4   : > { %v445_v0 = vpop.permute.xlu1 %444  ;;  %v443_v1 = vpop.permute.xlu0 %442 }
  0xb5   : > { %v450_v2 = vsel %vm448_vm9, %v445_v0, %v447_v63  ;;  %v449_v3 = vsel %vm448_vm9, %v443_v1, %v445_v0  ;;  %v641_v18 = vpop.permute.xlu2 %640 }
  0xb6   : > { %v453_v7 = vsel %vm1222_vm4, %v449_v3, 0.0  ;;  %v454_v8 = vsel %vm1226_vm5, %v450_v2, 0.0 }
  0xb7   : > { %958 = vmatpush.msk.msrb.mxu2 %vm272_vm1, %v453_v7  ;;  %960 = vmatpush.msk.msrb.mxu3 %vm272_vm1, %v454_v8 }
  0xb8   : > { %959 = vmatmul.msk.f32.vlgmr.msrb.gmra.mxu2 %vm268_vm2, %v940_v6  ;;  %961 = vmatmul.msk.f32.vlgmr.msrb.gmra.mxu3 %vm268_vm2, %v940_v6 }
  0xb9   : > { %963 = vmatmul.msk.f32.vlgmr.msra.gmra.mxu0 %vm268_vm2, %v941_v9  ;;  %965 = vmatmul.msk.f32.vlgmr.msra.gmra.mxu1 %vm268_vm2, %v941_v9 }
  0xbd   : > { %v711_v28 = vpop.permute.xlu2 %710 }
  0xc2   : > { %v569_v13 = vpop.permute.xlu1 %568 }
  0xc3   : > { %v574_v14 = vsel %vm572_vm10, %v569_v13, %v571_v10 }
  0xc4   : > { %v578_v16 = vsel %vm1248_vm8, %v574_v14, 0.0  ;;  %v567_v17 = vpop.permute.xlu0 %566 }
  0xc5   : > { %v573_v19 = vsel %vm572_vm10, %v567_v17, %v569_v13  ;;  %968 = vmatpush.msk.msra.mxu3 %vm272_vm1, %v578_v16  ;;  %v775_v34 = vpop.permute.xlu2 %774 }
  0xc6   : > { %v577_v20 = vsel %vm1244_vm7, %v573_v19, 0.0  ;;  %969 = vmatmul.msk.f32.vlgmr.msra.gmra.mxu3 %vm268_vm2, %v942_v15 }
  0xc7   : > { %966 = vmatpush.msk.msra.mxu2 %vm272_vm1, %v577_v20 }
  0xc8   : > { %967 = vmatmul.msk.f32.vlgmr.msra.gmra.mxu2 %vm268_vm2, %v942_v15 }
  0xca   : > { %v639_v21 = vpop.permute.xlu1 %638 }
  0xcb   : > { %v644_v22 = vsel %vm642_vm11, %v639_v21, %v641_v18 }
  0xcc   : > { %v648_v24 = vsel %vm1226_vm5, %v644_v22, 0.0  ;;  %v637_v25 = vpop.permute.xlu0 %636 }
  0xcd   : > { %v643_v26 = vsel %vm642_vm11, %v637_v25, %v639_v21  ;;  %972 = vmatpush.msk.msrb.mxu1 %vm272_vm1, %v648_v24 }
  0xce   : > { %v647_v27 = vsel %vm1222_vm4, %v643_v26, 0.0  ;;  %973 = vmatmul.msk.f32.vlgmr.msrb.gmra.mxu1 %vm268_vm2, %v943_v23 }
  0xcf   : > { %970 = vmatpush.msk.msrb.mxu0 %vm272_vm1, %v647_v27 }
  0xd0   : > { %971 = vmatmul.msk.f32.vlgmr.msrb.gmra.mxu0 %vm268_vm2, %v943_v23 }
  0xd2   : > { %v709_v29 = vpop.permute.xlu1 %708 }
  0xd3   : > { %v714_v31 = vsel %vm712_vm12, %v709_v29, %v711_v28 }
  0xd4   : > { %v707_v32 = vpop.permute.xlu0 %706  ;;  %976 = vmatpush.msk.msrb.mxu3 %vm272_vm1, %v714_v31 }
  0xd5   : > { %v713_v33 = vsel %vm712_vm12, %v707_v32, %v709_v29  ;;  %977 = vmatmul.msk.f32.vlgmr.msrb.gmra.mxu3 %vm268_vm2, %v944_v30 }
  0xd6   : > { %974 = vmatpush.msk.msrb.mxu2 %vm272_vm1, %v713_v33 }
  0xd7   : > { %975 = vmatmul.msk.f32.vlgmr.msrb.gmra.mxu2 %vm268_vm2, %v944_v30 }
  0xda   : > { %v773_v35 = vpop.permute.xlu1 %772 }
  0xdb   : > { %v778_v36 = vsel %vm776_vm13, %v773_v35, %v775_v34 }
  0xdc   : > { %v782_v38 = vsel %vm1248_vm8, %v778_v36, 0.0  ;;  %v771_v39 = vpop.permute.xlu0 %770 }
  0xdd   : > { %v777_v40 = vsel %vm776_vm13, %v771_v39, %v773_v35  ;;  %980 = vmatpush.msk.msra.mxu1 %vm272_vm1, %v782_v38 }
  0xde   : > { %v781_v41 = vsel %vm1244_vm7, %v777_v40, 0.0  ;;  %981 = vmatmul.msk.f32.vlgmr.msra.gmra.mxu1 %vm268_vm2, %v945_v37 }
  0xdf   : > { %978 = vmatpush.msk.msra.mxu0 %vm272_vm1, %v781_v41 }
  0xe0   : > { %979 = vmatmul.msk.f32.vlgmr.msra.gmra.mxu0 %vm268_vm2, %v945_v37 }
  0xe4   : > { %v837_v9 = vpop.permute.xlu0 %836 }
 0x115   : > { %v314_v42 = vpop.f32.mrf.mxu1 }
 0x125   : > { %v294_v43 = vpop.f32.mrf.mxu0 }
 0x12b   : > { %v343_v45 = vpop.f32.mrf.mxu2 }
 0x12c   : > { %v363_v44 = vpop.f32.mrf.mxu3  ;;  %v344_v49 = vadd.f32 %v343_v45, %v294_v43 }
 0x12d   : > { %v431_v46 = vpop.f32.mrf.mxu1  ;;  %v411_v47 = vpop.f32.mrf.mxu0  ;;  %v364_v48 = vadd.f32 %v363_v44, %v314_v42 }
 0x12e   : > { %v434_v53 = vadd.f32 %v411_v47, %v344_v49 }
 0x12f   : > { %v435_v51 = vadd.f32 %v431_v46, %v364_v48 }
 0x136   : > { %v555_v54 = vpop.f32.mrf.mxu1  ;;  %v535_v56 = vpop.f32.mrf.mxu0 }
 0x13b   : > { %v501_v50 = vpop.f32.mrf.mxu3  ;;  %v481_v52 = vpop.f32.mrf.mxu2 }
 0x13c   : > { %v505_v55 = vadd.f32 %v501_v50, %v435_v51  ;;  %v504_v57 = vadd.f32 %v481_v52, %v434_v53 }
 0x13e   : > { %v559_v4 = vadd.f32 %v555_v54, %v505_v55  ;;  %v558_v59 = vadd.f32 %v535_v56, %v504_v57 }
 0x149   : > { %v625_v58 = vpop.f32.mrf.mxu3 }
 0x14a   : > { %v629_v60 = vadd.f32 %v625_v58, %v559_v4 }
 0x14b   : > { %v605_v5 = vpop.f32.mrf.mxu2  ;;  %v695_v61 = vpop.f32.mrf.mxu1 }
 0x14c   : > { %v628_v62 = vadd.f32 %v605_v5, %v558_v59  ;;  %v699_v0 = vadd.f32 %v695_v61, %v629_v60 }
 0x14d   : > { %v675_v63 = vpop.f32.mrf.mxu0 }
 0x14e   : > { %v698_v2 = vadd.f32 %v675_v63, %v628_v62 }
 0x158   : > { %v759_v1 = vpop.f32.mrf.mxu3 }
 0x159   : > { %v763_v3 = vadd.f32 %v759_v1, %v699_v0 }
 0x15a   : > { %v739_v6 = vpop.f32.mrf.mxu2 }
 0x15b   : > { %v762_v7 = vadd.f32 %v739_v6, %v698_v2  ;;  %v829_v8 = vpop.f32.mrf.mxu1 }
 0x15c   : > { %v833_v10 = vadd.f32 %v829_v8, %v763_v3 }
 0x15d   : > { %v809_v11 = vpop.f32.mrf.mxu0 }
 0x15e   : > { %v832_v12 = vadd.f32 %v809_v11, %v762_v7  ;;  %v840_v13 = vadd.f32 %v837_v9, %v833_v10 }
 0x160   : > { %v839_v14 = vadd.f32 %v837_v9, %v832_v12  ;;  %vm842_vm14 = vcmp.gt.f32.partialorder %v840_v13, 0.0  ;;  %v844_v15 = vmul.f32 0.1, %v840_v13 }
 0x162   : > { %vm841_vm15 = vcmp.gt.f32.partialorder %v839_v14, 0.0  ;;  %v843_v16 = vmul.f32 0.1, %v839_v14  ;;  %v846_v17 = vsel %vm842_vm14, %v840_v13, %v844_v15 }
 0x163   : > { %v850_v18 = vrot.slane %v846_v17, 4 }
 0x164   : > { %v845_v19 = vsel %vm841_vm15, %v839_v14, %v843_v16 }
 0x165   : > { %v849_v20 = vrot.slane %v845_v19, 4  ;;  %854 = vst [vmem:[%s1329_s20 + $0x8] sm:$0xf0] %v850_v18 }
 0x167   : > { %853 = vst [vmem:[%s1329_s20] sm:$0xf0] %v849_v20 }
 0x168   : > { %1066 = shalt.err (!%p1063_p3)
}
 0x169   : > { %989 = dma.vmem_to_hbm [thread:$0]  (%p1171_p5), %s870_s28, 256, %s872_s29, %s856_s16  }
 0x16a PF: > { %p995_p4 = scmp.ge.s32.totalorder %s1101_s15, 2  ;;  %s883_s10 = sand.u32 1, %s1089_s12  }
 0x16b   : > { %s884_s11 = scalar_lea.sflag [#allocation4], %s883_s10 }
 0x16c   : > { %p992_p7 = pnand %p995_p4, %p1175_p6 }
 0x16e   : > { %p993_p8 = pneg %p992_p7 }
 0x170   : > { %1084 = dma.done.wait (%p993_p8), %s884_s11, 256  }
 0x171   : > { %1086 = vsyncadd (%p993_p8), %s884_s11, 4294967040  ;;  %p13_p9 = scmp.ge.s32.totalorder %s1158_s18, 4   ;;  %s1385_s12 = smov %s1093_s13 }
 0x172   : > { %s1386_s13 = smov %s1097_s14  ;;  %s1387_s14 = smov %s1169_s21 }
 0x173   : > { %s1388_s15 = smov %s1158_s18  ;;  %15 = sbr.rel (!%p13_p9) target bundleno = 3 (0x3), region = 84 }
 0x178   :  { %890 = vsyncpa [#allocation4], 1 }
 0x179   :  { %892 = vsyncpa [#allocation4 + $0x1], 1 }

</bundles_post_ra>
